<compile_context>
chip_gen: v7x
topology: tpu7x:2x2x1
jax: 0.10.0
libtpu: 0.0.40
codegen_flags: <defaults>
</compile_context>

<pallas_src>
import functools

import jax
import jax.numpy as jnp
from jax import lax
from jax.experimental import pallas as pl
from jax.experimental.pallas import tpu as pltpu

_LANE = 128


def _round_up(x, m):
    return ((x + m - 1) // m) * m


def _bad_kernel(x_ref, out_ref, sum_acc, *, inv_n_sq):
    # x_ref: [D, tn] block of phaseXY.T ; sum_acc: [D, 1] f32 accumulator.
    i = pl.program_id(0)

    @pl.when(i == 0)
    def _init():
        sum_acc[...] = jnp.zeros_like(sum_acc)

    x = x_ref[...].astype(jnp.float32)                        # [D, tn]
    sum_acc[...] += jnp.sum(x, axis=-1, keepdims=True)        # lane reduce -> [D, 1]

    @pl.when(i == pl.num_programs(0) - 1)
    def _finalize():
        s = sum_acc[...]                                      # [D, 1]
        # sum(mean**2) == sum(s**2) * (1/N^2), N a compile-time constant.
        out_ref[...] = jnp.sum(jnp.square(s), axis=0, keepdims=True) * inv_n_sq


def _max_kernel(x_ref, m_ref, out_ref, num_acc, den_acc):
    # x_ref: [D, tn], m_ref: [S, tn]; num_acc: [D, S], den_acc: [1, S].
    i = pl.program_id(0)

    @pl.when(i == 0)
    def _init():
        num_acc[...] = jnp.zeros_like(num_acc)
        den_acc[...] = jnp.zeros_like(den_acc)

    x = x_ref[...]                                            # [D, tn]
    m = m_ref[...]                                            # [S, tn]
    # num[d, s] += sum_n x[d, n] * m[s, n] -- contract the lane dim (K = tn),
    # same A @ B^T form used by flash-attention Q.K^T.
    num_acc[...] += lax.dot_general(
        x, m, (((1,), (1,)), ((), ())),
        preferred_element_type=jnp.float32)                   # [D, S]
    # den[0, s] += sum_n m[s, n] -- ones-row matvec keeps the result lane-major
    # ([1, S]) so no transpose/relayout is needed at finalize time.
    ones_row = jnp.ones((1, m.shape[-1]), dtype=m.dtype)
    den_acc[...] += lax.dot_general(
        ones_row, m, (((1,), (1,)), ((), ())),
        preferred_element_type=jnp.float32)                   # [1, S]

    @pl.when(i == pl.num_programs(0) - 1)
    def _finalize():
        # NOTE: a session with zero segments gives den == 0 -> inf/NaN, which
        # exactly matches the PyTorch reference semantics (documented precondition).
        inv_den = pl.reciprocal(den_acc[...])                 # exact 1/x, [1, S]
        centroid = num_acc[...] * inv_den                     # [D, S]
        radius_sq = jnp.sum(jnp.square(centroid), axis=-1, keepdims=True)  # [D, 1]
        out_ref[...] = jnp.max(radius_sq, axis=0, keepdims=True)           # [1, 1]


def distribution_loss(phaseXY, sessionSegmentMatrix, kind='bad', block_n=512):
    """Pallas port of DistributionLoss.forward. Returns a float32 scalar."""
    n, d = phaseXY.shape
    _, s = sessionSegmentMatrix.shape

    # Lane-dense layout: the big axis (N) goes last.
    x_t = phaseXY.T                              # [D, N]
    m_t = sessionSegmentMatrix.T                 # [S, N]

    tn = _round_up(min(int(block_n), _round_up(n, _LANE)), _LANE)
    n_pad = _round_up(n, tn)
    if n_pad != n:                               # zero padding: exact no-op for sums
        x_t = jnp.pad(x_t, ((0, 0), (0, n_pad - n)))
        m_t = jnp.pad(m_t, ((0, 0), (0, n_pad - n)))
    grid = (n_pad // tn,)

    out_shape = jax.ShapeDtypeStruct((1, 1), jnp.float32)
    out_spec = pl.BlockSpec((1, 1), lambda i: (0, 0))
    # Single reduction axis carrying resident accumulators -> "arbitrary".
    cparams = pltpu.CompilerParams(dimension_semantics=("arbitrary",))
    x_bytes = jnp.dtype(phaseXY.dtype).itemsize
    m_bytes = jnp.dtype(sessionSegmentMatrix.dtype).itemsize

    if kind == 'max':
        cost = pl.CostEstimate(
            flops=int(2 * (d * s + s) * n_pad + 4 * d * s),
            transcendentals=0,
            bytes_accessed=int((d * x_bytes + s * m_bytes) * n_pad + 4))
        res = pl.pallas_call(
            _max_kernel,
            out_shape=out_shape,
            grid=grid,
            in_specs=[pl.BlockSpec((d, tn), lambda i: (0, i)),
                      pl.BlockSpec((s, tn), lambda i: (0, i))],
            out_specs=out_spec,
            scratch_shapes=[pltpu.VMEM((d, s), jnp.float32),
                            pltpu.VMEM((1, s), jnp.float32)],
            compiler_params=cparams,
            cost_estimate=cost,
        )(x_t, m_t)
    else:
        # 'bad' path: sessionSegmentMatrix is unused (matches PyTorch semantics).
        cost = pl.CostEstimate(
            flops=int(2 * d * n_pad + 3 * d),
            transcendentals=0,
            bytes_accessed=int(d * n_pad * x_bytes + 4))
        res = pl.pallas_call(
            functools.partial(_bad_kernel, inv_n_sq=1.0 / float(n) ** 2),
            out_shape=out_shape,
            grid=grid,
            in_specs=[pl.BlockSpec((d, tn), lambda i: (0, i))],
            out_specs=out_spec,
            scratch_shapes=[pltpu.VMEM((d, 1), jnp.float32)],
            compiler_params=cparams,
            cost_estimate=cost,
        )(x_t)
    return res[0, 0]


def _reference(phaseXY, ssm, kind='bad'):
    x = phaseXY.astype(jnp.float32)
    m = ssm.astype(jnp.float32)
    if kind == 'max':
        centroid = (x.T @ m) / jnp.sum(m, axis=0, keepdims=True)
        return jnp.max(jnp.sum(jnp.square(centroid), axis=1))
    return jnp.sum(jnp.square(jnp.mean(x, axis=0)))


if __name__ == "__main__":
    # segments N (deliberately not a multiple of 128, and > block_n, so both the
    # zero-padding and the multi-step grid accumulation are exercised),
    # phase dims D (X, Y), sessions S.
    N, D, S = 1000, 2, 8

    key = jax.random.PRNGKey(0)
    k_phase, k_sess = jax.random.split(key)

    phaseXY = jax.random.normal(k_phase, (N, D), dtype=jnp.float32)

    # One-hot session membership matrix [N, S]; guarantee no empty session
    # so the 'max' path's denominator is nonzero (same precondition as PyTorch).
    sess_id = jax.random.randint(k_sess, (N,), 0, S)
    sess_id = sess_id.at[:S].set(jnp.arange(S))
    sessionSegmentMatrix = jax.nn.one_hot(sess_id, S, dtype=jnp.float32)

    # Default path ('bad') — same default as the PyTorch module.
    loss_bad = distribution_loss(phaseXY, sessionSegmentMatrix, kind='bad',
                                 block_n=256)
    # Also exercise the 'max' path.
    loss_max = distribution_loss(phaseXY, sessionSegmentMatrix, kind='max',
                                 block_n=256)
    jax.block_until_ready((loss_bad, loss_max))

    ref_bad = _reference(phaseXY, sessionSegmentMatrix, 'bad')
    ref_max = _reference(phaseXY, sessionSegmentMatrix, 'max')
    assert jnp.allclose(loss_bad, ref_bad, rtol=1e-5, atol=1e-6), (loss_bad, ref_bad)
    assert jnp.allclose(loss_max, ref_max, rtol=1e-5, atol=1e-6), (loss_max, ref_max)

    print("KERNEL_OK")
</pallas_src>

<mosaic_0001>
module attributes {stable_mosaic.version = 11 : i64} {
  func.func @_bad_kernel(%arg0: i32, %arg1: memref<2x256xf32, #tpu.memory_space<vmem>>, %arg2: memref<1x1xf32, #tpu.memory_space<vmem>>, %arg3: memref<2x1xf32, #tpu.memory_space<vmem>>) attributes {dimension_semantics = [#tpu.dimension_semantics<arbitrary>], iteration_bounds = array<i64: 4>, scalar_prefetch = 0 : i64, scratch_operands = 1 : i64, tpu.core_type = #tpu.core_type<tc>, window_params = [{transform_indices = @transform_0, window_bounds = array<i64: 2, 256>}, {pipeline_mode = #tpu.pipeline_mode<synchronous>, transform_indices = @transform_1, window_bounds = array<i64: 1, 1>}]} {
    %c0_i32 = arith.constant 0 : i32
    %0 = arith.cmpi eq, %arg0, %c0_i32 : i32
    %1 = arith.extui %0 : i1 to i32
    %c0_i32_0 = arith.constant 0 : i32
    %2 = arith.cmpi ne, %1, %c0_i32_0 : i32
    scf.if %2 {
      %cst_7 = arith.constant 0.000000e+00 : f32
      %12 = vector.broadcast %cst_7 : f32 to vector<2x1xf32>
      %c0_8 = arith.constant 0 : index
      %c0_9 = arith.constant 0 : index
      %13 = vector.load %arg3[%c0_8, %c0_9] : memref<2x1xf32, #tpu.memory_space<vmem>>, vector<2x1xf32>
      tpu.vector_store %arg3[%c0_8, %c0_9], %12 {strides = array<i32>} : memref<2x1xf32, #tpu.memory_space<vmem>>, vector<2x1xf32>,
    } else {
    }
    %c0 = arith.constant 0 : index
    %c0_1 = arith.constant 0 : index
    %3 = vector.load %arg1[%c0, %c0_1] : memref<2x256xf32, #tpu.memory_space<vmem>>, vector<2x256xf32>
    %c0_2 = arith.constant 0 : index
    %c0_3 = arith.constant 0 : index
    %4 = vector.load %arg3[%c0_2, %c0_3] : memref<2x1xf32, #tpu.memory_space<vmem>>, vector<2x1xf32>
    %cst = arith.constant dense<0.000000e+00> : vector<2xf32>
    %5 = vector.multi_reduction <add>, %3, %cst [1] : vector<2x256xf32> to vector<2xf32>
    %6 = vector.shape_cast %5 : vector<2xf32> to vector<2x1xf32>
    %7 = arith.addf %4, %6 : vector<2x1xf32>
    %c0_4 = arith.constant 0 : index
    %c0_5 = arith.constant 0 : index
    %8 = vector.load %arg3[%c0_4, %c0_5] : memref<2x1xf32, #tpu.memory_space<vmem>>, vector<2x1xf32>
    tpu.vector_store %arg3[%c0_4, %c0_5], %7 {strides = array<i32>} : memref<2x1xf32, #tpu.memory_space<vmem>>, vector<2x1xf32>,
    %c3_i32 = arith.constant 3 : i32
    %9 = arith.cmpi eq, %arg0, %c3_i32 : i32
    %10 = arith.extui %9 : i1 to i32
    %c0_i32_6 = arith.constant 0 : i32
    %11 = arith.cmpi ne, %10, %c0_i32_6 : i32
    scf.if %11 {
      %c0_7 = arith.constant 0 : index
      %c0_8 = arith.constant 0 : index
      %12 = vector.load %arg3[%c0_7, %c0_8] : memref<2x1xf32, #tpu.memory_space<vmem>>, vector<2x1xf32>
      %13 = arith.mulf %12, %12 : vector<2x1xf32>
      %cst_9 = arith.constant dense<0.000000e+00> : vector<1xf32>
      %14 = vector.multi_reduction <add>, %13, %cst_9 [0] : vector<2x1xf32> to vector<1xf32>
      %15 = vector.shape_cast %14 : vector<1xf32> to vector<1x1xf32>
      %cst_10 = arith.constant 9.99999997E-7 : f32
      %16 = vector.broadcast %cst_10 : f32 to vector<1x1xf32>
      %17 = arith.mulf %15, %16 : vector<1x1xf32>
      %c0_11 = arith.constant 0 : index
      %c0_12 = arith.constant 0 : index
      %18 = vector.load %arg2[%c0_11, %c0_12] : memref<1x1xf32, #tpu.memory_space<vmem>>, vector<1x1xf32>
      tpu.vector_store %arg2[%c0_11, %c0_12], %17 {strides = array<i32>} : memref<1x1xf32, #tpu.memory_space<vmem>>, vector<1x1xf32>,
    } else {
    }
    return
  }
  func.func @transform_0(%arg0: i32) -> (i32, i32) {
    %c0_i32 = arith.constant 0 : i32
    %c0_i32_0 = arith.constant 0 : i32
    return %c0_i32, %arg0 : i32, i32
  }
  func.func @transform_1(%arg0: i32) -> (i32, i32) {
    %c0_i32 = arith.constant 0 : i32
    %c0_i32_0 = arith.constant 0 : i32
    %c0_i32_1 = arith.constant 0 : i32
    return %c0_i32, %c0_i32_0 : i32, i32
  }
}

</mosaic_0001>

<bundles_post_ra>
// kernel: tpu_custom_call.1
= control target key start
LH: loop header
LB: loop body
LE: loop exit
PB: predicated region body
PF: predicated region fallthrough
CT: control target
= control target key end

     0   :  { %6 = vsyncpa [#allocation4], 0  ;;  %s522_s0 = inlined_call_operand.hbm [shape: f32[2,1024], index: 0, kind: input, shape index: {}]   ;;  %s523_s1 = inlined_call_operand.hbm [shape: f32[1,1], index: 1, kind: output, shape index: {}]  }
   0x1   :  { %8 = vsyncpa [#allocation4 + $0x1], 0 }
   0x2   :  { %9 = vsyncpa [#allocation5], 0  ;;  %s395_s6 = smov 0   ;;  %s397_s7 = smov 0  }
   0x3   :  { %s399_s8 = smov 0   ;;  %s401_s9 = smov 0  }
   0x4 LB: > { %s414_s10 = sadd.s32 4294967295, %s380_s9   ;;  %s417_s11 = sadd.s32 1, %s380_s9   ;;  %s380_s9 = sphi %s401_s9, %s531_s9   ;;  %s376_s8 = sphi %s399_s8, %s530_s8   ;;  %s372_s7 = sphi %s397_s7, %s529_s7   ;;  %s368_s6 = sphi %s395_s6, %s528_s6  }
   0x5   : > { %s19_s12 = ssub.s32 %s380_s9, %s417_s11  ;;  %s22_s13 = sadd.s32 1, %s376_s8 }
   0x6   : > { %p20_p0 = scmp.eq.s32.totalorder %s19_s12, 0  ;;  %p29_p1 = scmp.ne.s32.totalorder %s376_s8, %s372_s7 }
   0x7   : > { %p30_p2 = scmp.eq.s32.totalorder %s380_s9, 0  ;;  %p35_p3 = scmp.ne.s32.totalorder %s372_s7, %s368_s6 }
   0x8   : > { %s427_s14 = scalar_select %p20_p0, %s376_s8, %s22_s13  }
   0x9   : > { %p31_p4 = por %p30_p2, %p29_p1  ;;  %p36_p5 = scmp.eq.s32.totalorder %s414_s10, 0 }
   0xa   : > { %p249_p6 = scmp.lt.s32.totalorder %s380_s9, 4  ;;  %s80_s16 = sand.u32 1, %s376_s8  }
   0xb   : > { %p431_p7 = por %p36_p5, %p35_p3  ;;  %s226_s17 = sshll.u32 %s80_s16, 2 }
   0xc   : > { %s238_s18 = sshll.u32 %s380_s9, 6  ;;  %s84_s22 = scalar_lea.vmem [#allocation3], %s226_s17 }
   0xd   : > { %s440_s21 = scalar_lea.hbm %s522_s0, %s238_s18  ;;  %s92_s23 = sshll.u32 %s84_s22, 4  ;;  %s442_s23 = int_to_ptr.vmem [resolvable:$true] %s92_s23 }
   0xe   : > { %p444_p8 = pnand %p249_p6, %p31_p4  ;;  %s81_s25 = scalar_lea.sflag [#allocation4], %s80_s16 }
   0xf   : > { %s286_s26 = scalar_lea.hbm %s440_s21, 64  ;;  %s291_s29 = scalar_lea.hbm %s522_s0, 256 }
  0x10   : > { %p287_p11 = scmp.ne.s32.totalorder %s440_s21, %s286_s26  ;;  %p288_p12 = pneg %p444_p8 }
  0x11   : > { %p292_p1 = scmp.lt.u32.totalorder %s440_s21, %s522_s0  ;;  %p293_p2 = scmp.lt.u32.totalorder %s291_s29, %s286_s26 }
  0x12   : > { %p289_p13 = pnand %p288_p12, %p287_p11  ;;  %p295_p4 = scmp.lt.u32.totalorder %s286_s26, %s440_s21 }
  0x13   : > { %p294_p3 = por %p293_p2, %p292_p1 }
  0x14   : > { %p290_p0 = pneg %p289_p13 }
  0x15   : > { %p296_p5 = por %p295_p4, %p294_p3 }
  0x17   : > { %p297_p6 = pnand %p296_p5, %p290_p0 }
  0x19   : > { %300 = shalt.err (!%p297_p6)
}
  0x1a   : > { %s301_s3 = scalar_lea.vmem %s442_s23, 64  ;;  %s382_s4 = smov [#allocation3]  }
  0x1b   : > { %p302_p11 = scmp.ne.s32.totalorder %s442_s23, %s301_s3  ;;  %s306_s5 = sshll.u32 %s382_s4, 4  ;;  %s307_s5 = int_to_ptr.vmem [resolvable:$false] %s306_s5 }
  0x1c   : > { %s308_s6 = scalar_lea.vmem %s307_s5, 128  ;;  %p309_p10 = scmp.lt.s32.totalorder %s442_s23, %s307_s5 }
  0x1d   : > { %p304_p13 = pnand %p302_p11, %p288_p12  ;;  %p310_p1 = scmp.lt.s32.totalorder %s308_s6, %s301_s3 }
  0x1f   : > { %p305_p9 = pneg %p304_p13  ;;  %p311_p2 = por %p310_p1, %p309_p10 }
  0x21   : > { %p312_p3 = pnand %p311_p2, %p305_p9 }
  0x23   : > { %315 = shalt.err (!%p312_p3)
}
  0x24   : > { %248 = dma.hbm_to_vmem [thread:$0]  (!%p444_p8), %s440_s21, 64, %s442_s23, %s81_s25  }
  0x25   : > { %p526_p0 = scmp.lt.s32.totalorder %s380_s9, 5  ;;  %p527_p4 = scmp.ge.s32.totalorder %s380_s9, 1 }
  0x27   : > { %p98_p12 = pnand %p527_p4, %p526_p0 }
  0x28   : > { %s103_s12 = sand.u32 (!%p98_p12), 1, %s372_s7  }
  0x29   : > { %101 = sbr.rel (%p98_p12) target bundleno = 259 (0x103), region = 24  ;;  %s230_s13 = sshll.u32 (!%p98_p12), %s103_s12, 2 }
  0x2a   : > { %s104_s16 = scalar_lea.sflag (!%p98_p12), [#allocation4], %s103_s12  ;;  %s107_s17 = scalar_lea.vmem (!%p98_p12), [#allocation3], %s230_s13 }
  0x30   : > { %359 = dma.done.wait (%p431_p7), %s104_s16, 64  }
  0x31   : > { %361 = vsyncadd (%p431_p7), %s104_s16, 4294967232  ;;  %p231_p9 = scmp.ne.s32.totalorder %s414_s10, 0 }
  0x32   : > { %vm126_vm0 = vcmask (!%p231_p9), 1024   ;;  %v383_v0 = vmov (!%p231_p9), 0.0  }
  0x33   : > { %125 = sbr.rel (%p231_p9) target bundleno = 58 (0x3a), region = 32  ;;  %127 = vst.msk [vmem:[#allocation2] sm:$0x3] (!%p231_p9), %vm126_vm0, %v383_v0 }
  0x3a PF: > { %v232_v1 = vld.sshfl [vmem:[%s107_s17] sm:$0x33 pattern:$0x76325410]  ;;  %vm141_vm1 = vcmask 1041408   ;;  %vm148_vm2 = vcmask 1024  }
  0x3b   : > { %v138_v2 = vcombine.high %v232_v1, %v232_v1  ;;  %v142_v3 = vsel %vm141_vm1, %v232_v1, 0.0  ;;  %v129_v6 = vld [vmem:[#allocation2] sm:$0x3]  ;;  %p233_p7 = scmp.ne.s32.totalorder %s414_s10, 3 }
  0x3c   : > { %vm164_vm3 = vcmask (!%p233_p7), 0  }
  0x3d   : > { %v143_v4 = vsel %vm141_vm1, %v138_v2, 0.0 }
  0x3e   : > { %v144_v5 = vadd.f32 %v143_v4, %v142_v3 }
  0x40   : > { %145 = vadd.xlane.f32.xlu0 %v144_v5 }
  0xca   : > { %153 = sbr.rel (%p233_p7) target bundleno = 234 (0xea), region = 36 }
  0xcd   : > { %v146_v7 = vpop.xlane.xlu0 %145 }
  0xce   : > { %v147_v8 = vadd.f32 %v146_v7, %v129_v6 }
  0xd0   : > { %149 = vst.msk [vmem:[#allocation2] sm:$0x3] %vm148_vm2, %v147_v8 }
  0xd7   : > { %v154_v9 = vld [vmem:[#allocation2] sm:$0x3] }
  0xd8   : > { %v155_v10 = vmul.f32 %v154_v9, %v154_v9 }
  0xda   : > { %v156_v11 = vsel %vm148_vm2, %v155_v10, 0.0 }
  0xdb   : > { %v157_v12 = vrot.slane %v156_v11, 4 }
  0xdd   : > { %v158_v13 = vadd.f32 %v157_v12, %v156_v11 }
  0xdf   : > { %v159_v14 = vrot.slane %v158_v13, 2 }
  0xe1   : > { %v160_v15 = vadd.f32 %v159_v14, %v158_v13 }
  0xe3   : > { %v161_v16 = vrot.slane %v160_v15, 1 }
  0xe5   : > { %v162_v17 = vadd.f32 %v161_v16, %v160_v15 }
  0xe7   : > { %v163_v18 = vmul.f32 1e-06, %v162_v17 }
  0xe9   : > { %165 = vst.msk [vmem:[#allocation6] sm:$0x1] %vm164_vm3, %v163_v18 }
  0xea PF: > { %p250_p8 = scmp.eq.s32.totalorder %s414_s10, 3  ;;  %s384_s9 = smov [#allocation6]  }
  0xeb   : > { %s173_s15 = sshll.u32 %s384_s9, 4  ;;  %s174_s15 = int_to_ptr.vmem [resolvable:$true] %s173_s15 }
  0xec   : > { %s316_s18 = scalar_lea.vmem %s174_s15, 16  ;;  %s322_s19 = scalar_lea.vmem %s174_s15, 32 }
  0xed   : > { %p317_p10 = scmp.ne.s32.totalorder %s174_s15, %s316_s18  ;;  %p323_p11 = scmp.lt.s32.totalorder %s174_s15, %s174_s15 }
  0xee   : > { %p324_p13 = scmp.lt.s32.totalorder %s322_s19, %s316_s18 }
  0xef   : > { %p318_p5 = pnand %p317_p10, %p250_p8 }
  0xf0   : > { %p325_p1 = por %p324_p13, %p323_p11 }
  0xf1   : > { %p319_p6 = pneg %p318_p5 }
  0xf3   : > { %p326_p2 = pnand %p325_p1, %p319_p6 }
  0xf5   : > { %329 = shalt.err (!%p326_p2)
}
  0xf6   : > { %s330_s22 = scalar_lea.hbm %s523_s1, 16 }
  0xf7   : > { %p331_p3 = scmp.ne.s32.totalorder %s523_s1, %s330_s22  ;;  %p336_p12 = scmp.lt.u32.totalorder %s330_s22, %s523_s1 }
  0xf9   : > { %p332_p0 = pnand %p331_p3, %p250_p8 }
  0xfb   : > { %p333_p4 = pneg %p332_p0 }
  0xfd   : > { %p338_p9 = pnand %p336_p12, %p333_p4 }
  0xff   : > { %341 = shalt.err (!%p338_p9)
}
 0x100   : > { %242 = dma.vmem_to_hbm [thread:$0]  (%p250_p8), %s174_s15, 16, %s523_s1, [#allocation5]  }
 0x101   : > { %363 = dma.done.wait (%p250_p8), [#allocation5], 16  }
 0x102   : > { %365 = vsyncadd (%p250_p8), [#allocation5], 4294967280 }
 0x103 PF: > { %p12_p7 = scmp.ge.s32.totalorder %s417_s11, 6   ;;  %s528_s6 = smov %s372_s7 }
 0x104   : > { %s529_s7 = smov %s376_s8  ;;  %s530_s8 = smov %s427_s14 }
 0x105   : > { %s531_s9 = smov %s417_s11  ;;  %14 = sbr.rel (!%p12_p7) target bundleno = 4 (0x4), region = 69 }
 0x10c   :  { %186 = vsyncpa [#allocation4], 1 }
 0x10d   :  { %188 = vsyncpa [#allocation4 + $0x1], 1 }
 0x10e   :  { %189 = vsyncpa [#allocation5], 1 }
 0x10f   :  { %191 = vsyncpa [#allocation5 + $0x1], 1 }

</bundles_post_ra>
